<compile_context>
chip_gen: v7x
topology: tpu7x:2x2x1
jax: 0.10.0
libtpu: 0.0.40
codegen_flags: <defaults>
</compile_context>

<pallas_src>
import functools

import jax
import jax.numpy as jnp
from jax.experimental import pallas as pl
from jax.experimental.pallas import tpu as pltpu

IN_DIM = 28 * 28          # 784 (kept un-padded on the HBM side)
H1 = 256
H2 = 64
PAD_H2 = 128              # 64-wide bottleneck padded to a full vreg lane width


def autoencoder_kernel(x_ref,
                       w1_ref, b1_ref,
                       w2_ref, b2_ref,
                       w3_ref, b3_ref,
                       w4_ref, b4_ref,
                       out_ref):
    # Encoder: Linear(784->256) + ReLU, Linear(256->64) + ReLU  (bottleneck padded to 128)
    x = x_ref[...].astype(jnp.bfloat16)                                # (tb, 784) bf16, cast in VMEM
    h = jnp.dot(x, w1_ref[...], preferred_element_type=jnp.float32) + b1_ref[...]
    h = jnp.maximum(h, 0.0).astype(jnp.bfloat16)                       # (tb, 256)
    h = jnp.dot(h, w2_ref[...], preferred_element_type=jnp.float32) + b2_ref[...]
    h = jnp.maximum(h, 0.0).astype(jnp.bfloat16)                       # (tb, 128), cols 64..127 exactly 0
    # Decoder: Linear(64->256) + ReLU, Linear(256->784) + Sigmoid
    h = jnp.dot(h, w3_ref[...], preferred_element_type=jnp.float32) + b3_ref[...]
    h = jnp.maximum(h, 0.0).astype(jnp.bfloat16)                       # (tb, 256)
    z = jnp.dot(h, w4_ref[...], preferred_element_type=jnp.float32) + b4_ref[...]
    # sigmoid(z) = 0.5 * (tanh(z/2) + 1): single EUP transcendental; mul/add on the VALU slot.
    out_ref[...] = (0.5 * (jnp.tanh(0.5 * z) + 1.0)).astype(out_ref.dtype)


def _pad2d(a, rows, cols):
    r, c = a.shape
    return jnp.pad(a, ((0, rows - r), (0, cols - c)))


def _prepare_params(params):
    """Pad only the bottleneck dim to 128 lanes; cast weights to bf16 (biases stay f32)."""
    w1, b1, w2, b2, w3, b3, w4, b4 = params
    w1p = w1.astype(jnp.bfloat16)                             # (784, 256)
    b1p = b1.astype(jnp.float32)                              # (1, 256)
    w2p = _pad2d(w2, H1, PAD_H2).astype(jnp.bfloat16)         # (256, 128)
    b2p = _pad2d(b2, 1, PAD_H2).astype(jnp.float32)           # (1, 128)
    w3p = _pad2d(w3, PAD_H2, H1).astype(jnp.bfloat16)         # (128, 256)
    b3p = b3.astype(jnp.float32)                              # (1, 256)
    w4p = w4.astype(jnp.bfloat16)                             # (256, 784) — no output-col padding
    b4p = b4.astype(jnp.float32)                              # (1, 784)
    return w1p, b1p, w2p, b2p, w3p, b3p, w4p, b4p


@functools.partial(jax.jit, static_argnames=("batch_tile",))
def autoencoder_forward(x_nchw, params, batch_tile=1024):
    """x_nchw: (B, 1, 28, 28) float32 -> (B, 1, 28, 28) float32."""
    B = x_nchw.shape[0]

    # nn.Flatten(): contiguous view, no copy / no pad / no cast here.
    x2d = x_nchw.reshape(B, IN_DIM)

    w1, b1, w2, b2, w3, b3, w4, b4 = _prepare_params(params)

    # Batch tile: as large as the VMEM budget allows (default 1024 rows) to fill
    # the MXU M dimension and amortize the ~0.35 us per-step pipeline overhead.
    # Keep it a multiple of 8 sublanes whenever we actually tile the batch.
    tb = min(batch_tile, B)
    if tb < B:
        tb = max(8, (tb // 8) * 8)
    grid = (pl.cdiv(B, tb),)

    # Weights/biases stay fully resident in VMEM (constant index maps ⇒ no per-step
    # re-DMA); only the batch dimension is tiled over the grid.
    full = lambda a: pl.BlockSpec(a.shape, lambda i: (0, 0))
    out2d = pl.pallas_call(
        autoencoder_kernel,
        out_shape=jax.ShapeDtypeStruct((B, IN_DIM), jnp.float32),
        grid_spec=pltpu.PrefetchScalarGridSpec(
            num_scalar_prefetch=0,
            grid=grid,
            in_specs=[
                pl.BlockSpec((tb, IN_DIM), lambda i: (i, 0)),   # x tile, f32, 784 wide
                full(w1), full(b1),
                full(w2), full(b2),
                full(w3), full(b3),
                full(w4), full(b4),
            ],
            out_specs=pl.BlockSpec((tb, IN_DIM), lambda i: (i, 0)),
        ),
        compiler_params=pltpu.CompilerParams(
            dimension_semantics=("parallel",),
            # 1024-row f32 in/out blocks double-buffered (~12 MiB) + weights +
            # intermediate spills: above v5e's 16 MiB default scoped limit, well
            # below v7x's 64 MiB physical per TC.
            vmem_limit_bytes=48 * 1024 * 1024),
    )(x2d, w1, b1, w2, b2, w3, b3, w4, b4)

    # nn.Unflatten(1, (1, 28, 28)) — contiguous, free.
    return out2d.reshape(B, 1, 28, 28)


def init_params(key):
    """Deterministic init mimicking PyTorch nn.Linear default (U[-1/sqrt(fan_in), 1/sqrt(fan_in)]).

    Weights are stored as (in_features, out_features) — already transposed relative
    to torch's (out, in) — so the kernel computes x @ W + b.
    """
    def linear(key, fan_in, fan_out):
        kw, kb = jax.random.split(key)
        bound = 1.0 / jnp.sqrt(fan_in)
        w = jax.random.uniform(kw, (fan_in, fan_out), jnp.float32, -bound, bound)
        b = jax.random.uniform(kb, (1, fan_out), jnp.float32, -bound, bound)
        return w, b

    k1, k2, k3, k4 = jax.random.split(key, 4)
    w1, b1 = linear(k1, IN_DIM, H1)   # encoder Linear(784, 256)
    w2, b2 = linear(k2, H1, H2)       # encoder Linear(256, 64)
    w3, b3 = linear(k3, H2, H1)       # decoder Linear(64, 256)
    w4, b4 = linear(k4, H1, IN_DIM)   # decoder Linear(256, 784)
    return (w1, b1, w2, b2, w3, b3, w4, b4)


def reference_forward(x_nchw, params):
    """Pure-JAX f32 reference matching the PyTorch module."""
    w1, b1, w2, b2, w3, b3, w4, b4 = params
    x = x_nchw.reshape(x_nchw.shape[0], IN_DIM)
    h = jax.nn.relu(x @ w1 + b1)
    h = jax.nn.relu(h @ w2 + b2)
    h = jax.nn.relu(h @ w3 + b3)
    y = jax.nn.sigmoid(h @ w4 + b4)
    return y.reshape(x_nchw.shape[0], 1, 28, 28)


if __name__ == "__main__":
    key = jax.random.PRNGKey(0)
    kx, kp = jax.random.split(key)

    B = 16
    x = jax.random.uniform(kx, (B, 1, 28, 28), jnp.float32)  # MNIST-like input
    params = init_params(kp)
    ref = reference_forward(x, params)

    # Default path: single-step grid (tile == full batch).
    out = jax.block_until_ready(autoencoder_forward(x, params))
    assert out.shape == (B, 1, 28, 28), out.shape
    max_err = float(jnp.max(jnp.abs(out - ref)))
    assert max_err < 2e-2, max_err

    # Tiled path: exercises a 2-step grid with 8-row tiles.
    out_tiled = jax.block_until_ready(autoencoder_forward(x, params, batch_tile=8))
    max_err_tiled = float(jnp.max(jnp.abs(out_tiled - ref)))
    assert max_err_tiled < 2e-2, max_err_tiled

    print("KERNEL_OK")
</pallas_src>

<mosaic_0001>
module attributes {stable_mosaic.version = 11 : i64} {
  func.func @autoencoder_kernel(%arg0: i32, %arg1: memref<16x784xf32, #tpu.memory_space<vmem>>, %arg2: memref<784x256xbf16, #tpu.memory_space<vmem>>, %arg3: memref<1x256xf32, #tpu.memory_space<vmem>>, %arg4: memref<256x128xbf16, #tpu.memory_space<vmem>>, %arg5: memref<1x128xf32, #tpu.memory_space<vmem>>, %arg6: memref<128x256xbf16, #tpu.memory_space<vmem>>, %arg7: memref<1x256xf32, #tpu.memory_space<vmem>>, %arg8: memref<256x784xbf16, #tpu.memory_space<vmem>>, %arg9: memref<1x784xf32, #tpu.memory_space<vmem>>, %arg10: memref<16x784xf32, #tpu.memory_space<vmem>>) attributes {dimension_semantics = [#tpu.dimension_semantics<parallel>], iteration_bounds = array<i64: 1>, scalar_prefetch = 0 : i64, scratch_operands = 0 : i64, tpu.core_type = #tpu.core_type<tc>, window_params = [{transform_indices = @transform_0, window_bounds = array<i64: 16, 784>}, {pipeline_mode = #tpu.pipeline_mode<synchronous>, transform_indices = @transform_1, window_bounds = array<i64: 784, 256>}, {pipeline_mode = #tpu.pipeline_mode<synchronous>, transform_indices = @transform_2, window_bounds = array<i64: 1, 256>}, {pipeline_mode = #tpu.pipeline_mode<synchronous>, transform_indices = @transform_3, window_bounds = array<i64: 256, 128>}, {pipeline_mode = #tpu.pipeline_mode<synchronous>, transform_indices = @transform_4, window_bounds = array<i64: 1, 128>}, {pipeline_mode = #tpu.pipeline_mode<synchronous>, transform_indices = @transform_5, window_bounds = array<i64: 128, 256>}, {pipeline_mode = #tpu.pipeline_mode<synchronous>, transform_indices = @transform_6, window_bounds = array<i64: 1, 256>}, {pipeline_mode = #tpu.pipeline_mode<synchronous>, transform_indices = @transform_7, window_bounds = array<i64: 256, 784>}, {pipeline_mode = #tpu.pipeline_mode<synchronous>, transform_indices = @transform_8, window_bounds = array<i64: 1, 784>}, {transform_indices = @transform_9, window_bounds = array<i64: 16, 784>}]} {
    %c0 = arith.constant 0 : index
    %c0_0 = arith.constant 0 : index
    %0 = vector.load %arg1[%c0, %c0_0] : memref<16x784xf32, #tpu.memory_space<vmem>>, vector<16x784xf32>
    %1 = arith.truncf %0 : vector<16x784xf32> to vector<16x784xbf16>
    %c0_1 = arith.constant 0 : index
    %c0_2 = arith.constant 0 : index
    %2 = vector.load %arg2[%c0_1, %c0_2] : memref<784x256xbf16, #tpu.memory_space<vmem>>, vector<784x256xbf16>
    %cst = arith.constant dense<0.000000e+00> : vector<16x256xf32>
    %3 = tpu.matmul %1, %2, %cst {dimension_numbers = #tpu.dot_dimension_numbers<[1], [0], [0], [1], [0, 0, 1, 1], [], []>} : vector<16x784xbf16>, vector<784x256xbf16>, vector<16x256xf32> -> vector<16x256xf32>
    %c0_3 = arith.constant 0 : index
    %c0_4 = arith.constant 0 : index
    %4 = vector.load %arg3[%c0_3, %c0_4] : memref<1x256xf32, #tpu.memory_space<vmem>>, vector<1x256xf32>
    %5 = vector.broadcast %4 : vector<1x256xf32> to vector<16x256xf32>
    %6 = arith.addf %3, %5 : vector<16x256xf32>
    %cst_5 = arith.constant 0.000000e+00 : f32
    %7 = vector.broadcast %cst_5 : f32 to vector<16x256xf32>
    %8 = arith.maximumf %6, %7 : vector<16x256xf32>
    %9 = arith.truncf %8 : vector<16x256xf32> to vector<16x256xbf16>
    %c0_6 = arith.constant 0 : index
    %c0_7 = arith.constant 0 : index
    %10 = vector.load %arg4[%c0_6, %c0_7] : memref<256x128xbf16, #tpu.memory_space<vmem>>, vector<256x128xbf16>
    %cst_8 = arith.constant dense<0.000000e+00> : vector<16x128xf32>
    %11 = tpu.matmul %9, %10, %cst_8 {dimension_numbers = #tpu.dot_dimension_numbers<[1], [0], [0], [1], [0, 0, 1, 1], [], []>} : vector<16x256xbf16>, vector<256x128xbf16>, vector<16x128xf32> -> vector<16x128xf32>
    %c0_9 = arith.constant 0 : index
    %c0_10 = arith.constant 0 : index
    %12 = vector.load %arg5[%c0_9, %c0_10] : memref<1x128xf32, #tpu.memory_space<vmem>>, vector<1x128xf32>
    %13 = vector.broadcast %12 : vector<1x128xf32> to vector<16x128xf32>
    %14 = arith.addf %11, %13 : vector<16x128xf32>
    %cst_11 = arith.constant 0.000000e+00 : f32
    %15 = vector.broadcast %cst_11 : f32 to vector<16x128xf32>
    %16 = arith.maximumf %14, %15 : vector<16x128xf32>
    %17 = arith.truncf %16 : vector<16x128xf32> to vector<16x128xbf16>
    %c0_12 = arith.constant 0 : index
    %c0_13 = arith.constant 0 : index
    %18 = vector.load %arg6[%c0_12, %c0_13] : memref<128x256xbf16, #tpu.memory_space<vmem>>, vector<128x256xbf16>
    %cst_14 = arith.constant dense<0.000000e+00> : vector<16x256xf32>
    %19 = tpu.matmul %17, %18, %cst_14 {dimension_numbers = #tpu.dot_dimension_numbers<[1], [0], [0], [1], [0, 0, 1, 1], [], []>} : vector<16x128xbf16>, vector<128x256xbf16>, vector<16x256xf32> -> vector<16x256xf32>
    %c0_15 = arith.constant 0 : index
    %c0_16 = arith.constant 0 : index
    %20 = vector.load %arg7[%c0_15, %c0_16] : memref<1x256xf32, #tpu.memory_space<vmem>>, vector<1x256xf32>
    %21 = vector.broadcast %20 : vector<1x256xf32> to vector<16x256xf32>
    %22 = arith.addf %19, %21 : vector<16x256xf32>
    %cst_17 = arith.constant 0.000000e+00 : f32
    %23 = vector.broadcast %cst_17 : f32 to vector<16x256xf32>
    %24 = arith.maximumf %22, %23 : vector<16x256xf32>
    %25 = arith.truncf %24 : vector<16x256xf32> to vector<16x256xbf16>
    %c0_18 = arith.constant 0 : index
    %c0_19 = arith.constant 0 : index
    %26 = vector.load %arg8[%c0_18, %c0_19] : memref<256x784xbf16, #tpu.memory_space<vmem>>, vector<256x784xbf16>
    %cst_20 = arith.constant dense<0.000000e+00> : vector<16x784xf32>
    %27 = tpu.matmul %25, %26, %cst_20 {dimension_numbers = #tpu.dot_dimension_numbers<[1], [0], [0], [1], [0, 0, 1, 1], [], []>} : vector<16x256xbf16>, vector<256x784xbf16>, vector<16x784xf32> -> vector<16x784xf32>
    %c0_21 = arith.constant 0 : index
    %c0_22 = arith.constant 0 : index
    %28 = vector.load %arg9[%c0_21, %c0_22] : memref<1x784xf32, #tpu.memory_space<vmem>>, vector<1x784xf32>
    %29 = vector.broadcast %28 : vector<1x784xf32> to vector<16x784xf32>
    %30 = arith.addf %27, %29 : vector<16x784xf32>
    %cst_23 = arith.constant 5.000000e-01 : f32
    %31 = vector.broadcast %cst_23 : f32 to vector<16x784xf32>
    %32 = arith.mulf %31, %30 : vector<16x784xf32>
    %33 = math.tanh %32 : vector<16x784xf32>
    %cst_24 = arith.constant 1.000000e+00 : f32
    %34 = vector.broadcast %cst_24 : f32 to vector<16x784xf32>
    %35 = arith.addf %33, %34 : vector<16x784xf32>
    %cst_25 = arith.constant 5.000000e-01 : f32
    %36 = vector.broadcast %cst_25 : f32 to vector<16x784xf32>
    %37 = arith.mulf %36, %35 : vector<16x784xf32>
    %c0_26 = arith.constant 0 : index
    %c0_27 = arith.constant 0 : index
    %38 = vector.load %arg10[%c0_26, %c0_27] : memref<16x784xf32, #tpu.memory_space<vmem>>, vector<16x784xf32>
    tpu.vector_store %arg10[%c0_26, %c0_27], %37 {strides = array<i32>} : memref<16x784xf32, #tpu.memory_space<vmem>>, vector<16x784xf32>,
    return
  }
  func.func @transform_0(%arg0: i32) -> (i32, i32) {
    %c0_i32 = arith.constant 0 : i32
    %c0_i32_0 = arith.constant 0 : i32
    return %arg0, %c0_i32 : i32, i32
  }
  func.func @transform_1(%arg0: i32) -> (i32, i32) {
    %c0_i32 = arith.constant 0 : i32
    %c0_i32_0 = arith.constant 0 : i32
    %c0_i32_1 = arith.constant 0 : i32
    return %c0_i32, %c0_i32_0 : i32, i32
  }
  func.func @transform_2(%arg0: i32) -> (i32, i32) {
    %c0_i32 = arith.constant 0 : i32
    %c0_i32_0 = arith.constant 0 : i32
    %c0_i32_1 = arith.constant 0 : i32
    return %c0_i32, %c0_i32_0 : i32, i32
  }
  func.func @transform_3(%arg0: i32) -> (i32, i32) {
    %c0_i32 = arith.constant 0 : i32
    %c0_i32_0 = arith.constant 0 : i32
    %c0_i32_1 = arith.constant 0 : i32
    return %c0_i32, %c0_i32_0 : i32, i32
  }
  func.func @transform_4(%arg0: i32) -> (i32, i32) {
    %c0_i32 = arith.constant 0 : i32
    %c0_i32_0 = arith.constant 0 : i32
    %c0_i32_1 = arith.constant 0 : i32
    return %c0_i32, %c0_i32_0 : i32, i32
  }
  func.func @transform_5(%arg0: i32) -> (i32, i32) {
    %c0_i32 = arith.constant 0 : i32
    %c0_i32_0 = arith.constant 0 : i32
    %c0_i32_1 = arith.constant 0 : i32
    return %c0_i32, %c0_i32_0 : i32, i32
  }
  func.func @transform_6(%arg0: i32) -> (i32, i32) {
    %c0_i32 = arith.constant 0 : i32
    %c0_i32_0 = arith.constant 0 : i32
    %c0_i32_1 = arith.constant 0 : i32
    return %c0_i32, %c0_i32_0 : i32, i32
  }
  func.func @transform_7(%arg0: i32) -> (i32, i32) {
    %c0_i32 = arith.constant 0 : i32
    %c0_i32_0 = arith.constant 0 : i32
    %c0_i32_1 = arith.constant 0 : i32
    return %c0_i32, %c0_i32_0 : i32, i32
  }
  func.func @transform_8(%arg0: i32) -> (i32, i32) {
    %c0_i32 = arith.constant 0 : i32
    %c0_i32_0 = arith.constant 0 : i32
    %c0_i32_1 = arith.constant 0 : i32
    return %c0_i32, %c0_i32_0 : i32, i32
  }
  func.func @transform_9(%arg0: i32) -> (i32, i32) {
    %c0_i32 = arith.constant 0 : i32
    %c0_i32_0 = arith.constant 0 : i32
    return %arg0, %c0_i32 : i32, i32
  }
}

</mosaic_0001>

<bundles_post_ra>
// kernel: autoencoder_forward.1
= control target key start
LH: loop header
LB: loop body
LE: loop exit
PB: predicated region body
PF: predicated region fallthrough
CT: control target
= control target key end

     0   :  { %vm654_vm0 = vcmask 130048   ;;  %s3753_s1 = inlined_call_operand.vmem [shape: bf16[784,256], index: 1, kind: input, shape index: {}]   ;;  %s3754_s0 = inlined_call_operand.vmem [shape: f32[16,784], index: 0, kind: input, shape index: {}]   ;;  %s3755_s3 = inlined_call_operand.vmem [shape: bf16[256,128], index: 3, kind: input, shape index: {}]   ;;  %s3756_s5 = inlined_call_operand.vmem [shape: bf16[128,256], index: 5, kind: input, shape index: {}]   ;;  %s3757_s2 = inlined_call_operand.vmem [shape: f32[1,256], index: 2, kind: input, shape index: {}]   ;;  %s3758_s7 = inlined_call_operand.vmem [shape: bf16[256,784], index: 7, kind: input, shape index: {}]   ;;  %s3759_s4 = inlined_call_operand.vmem [shape: f32[1,128], index: 4, kind: input, shape index: {}]   ;;  %s3760_s6 = inlined_call_operand.vmem [shape: f32[1,256], index: 6, kind: input, shape index: {}]   ;;  %s3761_s8 = inlined_call_operand.vmem [shape: f32[1,784], index: 8, kind: input, shape index: {}]   ;;  %s3762_s9 = inlined_call_operand.vmem [shape: f32[16,784], index: 9, kind: output, shape index: {}]  }
   0x1   :  { %v2462_v0 = vld [vmem:[%s3753_s1 + $0x4] ss:$8 sps:$4 sm:$0xff]   ;;  %v2464_v1 = vld [vmem:[%s3753_s1] ss:$8 sps:$4 sm:$0xff]   ;;  %v2465_v2 = vld [vmem:[%s3753_s1 + $0x14] ss:$8 sps:$4 sm:$0xff]  }
   0x2   :  { %658 = vmatprep.subr.bf16.mxu0 %v2462_v0  ;;  %v2467_v3 = vld [vmem:[%s3753_s1 + $0x10] ss:$8 sps:$4 sm:$0xff]   ;;  %v2468_v4 = vld [vmem:[%s3753_s1 + $0x24] ss:$8 sps:$4 sm:$0xff]   ;;  %v2470_v5 = vld [vmem:[%s3753_s1 + $0x20] ss:$8 sps:$4 sm:$0xff]  }
   0x3   :  { %659 = vmatpush1.bf16.msra.mxu0 %v2464_v1  ;;  %v2471_v6 = vld [vmem:[%s3753_s1 + $0x34] ss:$8 sps:$4 sm:$0xff]   ;;  %v2473_v7 = vld [vmem:[%s3753_s1 + $0x30] ss:$8 sps:$4 sm:$0xff]   ;;  %v2474_v8 = vld [vmem:[%s3753_s1 + $0x44] ss:$8 sps:$4 sm:$0xff]  }
   0x4   :  { %660 = vmatprep.subr.bf16.mxu0 %v2465_v2  ;;  %v2476_v9 = vld [vmem:[%s3753_s1 + $0x40] ss:$8 sps:$4 sm:$0xff]   ;;  %v2477_v10 = vld [vmem:[%s3753_s1 + $0x54] ss:$8 sps:$4 sm:$0xff]   ;;  %v2479_v11 = vld [vmem:[%s3753_s1 + $0x50] ss:$8 sps:$4 sm:$0xff]  }
   0x5   :  { %v2480_v12 = vld [vmem:[%s3753_s1 + $0x64] ss:$8 sps:$4 sm:$0xff]   ;;  %v2482_v16 = vld [vmem:[%s3753_s1 + $0x60] ss:$8 sps:$4 sm:$0xff]   ;;  %v2483_v17 = vld [vmem:[%s3753_s1 + $0x74] ss:$8 sps:$4 sm:$0xff]  }
   0x6   :  { %v34_v13 = vld [vmem:[%s3754_s0 + $0x8] sm:$0xff]  ;;  %v41_v14 = vld [vmem:[%s3754_s0 + $0x40] sm:$0xff]  ;;  %v2485_v18 = vld [vmem:[%s3753_s1 + $0x70] ss:$8 sps:$4 sm:$0xff]  }
   0x7   :  { %661 = vmatpush1.bf16.msra.mxu0 %v2467_v3  ;;  %v48_v15 = vpack.c.bf16 %v41_v14, %v34_v13  ;;  %v2486_v19 = vld [vmem:[%s3753_s1 + $0x84] ss:$8 sps:$4 sm:$0xff]   ;;  %v2488_v20 = vld [vmem:[%s3753_s1 + $0x80] ss:$8 sps:$4 sm:$0xff]   ;;  %v2489_v21 = vld [vmem:[%s3753_s1 + $0x94] ss:$8 sps:$4 sm:$0xff]  }
   0x8   :  { %662 = vmatprep.subr.bf16.mxu0 %v2468_v4  ;;  %v2491_v22 = vld [vmem:[%s3753_s1 + $0x90] ss:$8 sps:$4 sm:$0xff]   ;;  %v2492_v23 = vld [vmem:[%s3753_s1 + $0xa4] ss:$8 sps:$4 sm:$0xff]   ;;  %v2494_v24 = vld [vmem:[%s3753_s1 + $0xa0] ss:$8 sps:$4 sm:$0xff]  }
   0x9   :  { %690 = vmatprep.mubr.bf16.mxu0 %v48_v15  ;;  %v2495_v25 = vld [vmem:[%s3753_s1 + $0xb4] ss:$8 sps:$4 sm:$0xff]   ;;  %v2497_v26 = vld [vmem:[%s3753_s1 + $0xb0] ss:$8 sps:$4 sm:$0xff]   ;;  %v2498_v27 = vld [vmem:[%s3753_s1 + $0xc4] ss:$8 sps:$4 sm:$0xff]  }
   0xa   :  { %v2500_v28 = vld [vmem:[%s3753_s1 + $0xc0] ss:$8 sps:$4 sm:$0xff]   ;;  %v2501_v29 = vld [vmem:[%s3753_s1 + $0xd4] ss:$8 sps:$4 sm:$0xff]   ;;  %v2503_v30 = vld [vmem:[%s3753_s1 + $0xd0] ss:$8 sps:$4 sm:$0xff]  }
   0xb   :  { %663 = vmatpush1.bf16.msra.mxu0 %v2470_v5  ;;  %v2504_v31 = vld [vmem:[%s3753_s1 + $0xe4] ss:$8 sps:$4 sm:$0xff]   ;;  %v2506_v32 = vld [vmem:[%s3753_s1 + $0xe0] ss:$8 sps:$4 sm:$0xff]   ;;  %v2507_v33 = vld [vmem:[%s3753_s1 + $0xf4] ss:$8 sps:$4 sm:$0xff]  }
   0xc   :  { %664 = vmatprep.subr.bf16.mxu0 %v2471_v6  ;;  %v2509_v34 = vld [vmem:[%s3753_s1 + $0xf0] ss:$8 sps:$4 sm:$0xff]   ;;  %v2512_v35 = vld [vmem:[%s3753_s1 + $0x104] ss:$8 sps:$4 sm:$0xff]   ;;  %v2510_v41 = vld [vmem:[%s3753_s1 + $0x100] ss:$8 sps:$4 sm:$0xff]  }
   0xd   :  { %v33_v36 = vld [vmem:[%s3754_s0] sm:$0xff]  ;;  %v40_v37 = vld [vmem:[%s3754_s0 + $0x38] sm:$0xff]  ;;  %v43_v39 = vld [vmem:[%s3754_s0 + $0x50] sm:$0xff] }
   0xe   :  { %v36_v38 = vld [vmem:[%s3754_s0 + $0x18] sm:$0xff]  ;;  %v47_v40 = vpack.c.bf16 %v40_v37, %v33_v36  ;;  %v2518_v45 = vld [vmem:[%s3753_s1 + $0x124] ss:$8 sps:$4 sm:$0xff]   ;;  %v2516_v46 = vld [vmem:[%s3753_s1 + $0x120] ss:$8 sps:$4 sm:$0xff]  }
   0xf   :  { %665 = vmatpush1.bf16.msra.mxu0 %v2473_v7  ;;  %v50_v42 = vpack.c.bf16 %v43_v39, %v36_v38  ;;  %v2515_v43 = vld [vmem:[%s3753_s1 + $0x114] ss:$8 sps:$4 sm:$0xff]   ;;  %v2513_v44 = vld [vmem:[%s3753_s1 + $0x110] ss:$8 sps:$4 sm:$0xff]   ;;  %v2524_v49 = vld [vmem:[%s3753_s1 + $0x144] ss:$8 sps:$4 sm:$0xff]  }
  0x10   :  { %666 = vmatprep.subr.bf16.mxu0 %v2474_v8  ;;  %v2521_v47 = vld [vmem:[%s3753_s1 + $0x134] ss:$8 sps:$4 sm:$0xff]   ;;  %v2519_v48 = vld [vmem:[%s3753_s1 + $0x130] ss:$8 sps:$4 sm:$0xff]   ;;  %v2522_v50 = vld [vmem:[%s3753_s1 + $0x140] ss:$8 sps:$4 sm:$0xff]  }
  0x11   :  { %v2527_v51 = vld [vmem:[%s3753_s1 + $0x154] ss:$8 sps:$4 sm:$0xff]   ;;  %v2609_v52 = vld [vmem:[%s3755_s3 + $0x40] sm:$0xff]   ;;  %v2525_v54 = vld [vmem:[%s3753_s1 + $0x150] ss:$8 sps:$4 sm:$0xff]  }
  0x12   :  { %v2610_v53 = vld [vmem:[%s3755_s3] sm:$0xff]   ;;  %2401 = vmatprep.subr.bf16.mxu1 %v2609_v52  ;;  %v2611_v55 = vld [vmem:[%s3755_s3 + $0x48] sm:$0xff]   ;;  %v2613_v57 = vld [vmem:[%s3755_s3 + $0x50] sm:$0xff]  }
  0x13   :  { %667 = vmatpush1.bf16.msra.mxu0 %v2476_v9  ;;  %2402 = vmatpush3.bf16.msra.mxu1 %v2610_v53  ;;  %v2612_v56 = vld [vmem:[%s3755_s3 + $0x8] sm:$0xff]   ;;  %v2614_v60 = vld [vmem:[%s3755_s3 + $0x10] sm:$0xff]   ;;  %v2615_v61 = vld [vmem:[%s3755_s3 + $0x58] sm:$0xff]  }
  0x14   :  { %668 = vmatprep.subr.bf16.mxu0 %v2477_v10  ;;  %2403 = vmatprep.subr.bf16.mxu1 %v2611_v55  ;;  %v2530_v58 = vld [vmem:[%s3753_s1 + $0x164] ss:$8 sps:$4 sm:$0xff]   ;;  %v2528_v59 = vld [vmem:[%s3753_s1 + $0x160] ss:$8 sps:$4 sm:$0xff]   ;;  %v2533_v62 = vld [vmem:[%s3753_s1 + $0x174] ss:$8 sps:$4 sm:$0xff]  }
  0x15   :  { %v2531_v63 = vld [vmem:[%s3753_s1 + $0x170] ss:$8 sps:$4 sm:$0xff]   ;;  %v2536_v1 = vld [vmem:[%s3753_s1 + $0x184] ss:$8 sps:$4 sm:$0xff]   ;;  %v2534_v4 = vld [vmem:[%s3753_s1 + $0x180] ss:$8 sps:$4 sm:$0xff]  }
  0x16   :  { %v2616_v0 = vld [vmem:[%s3755_s3 + $0x18] sm:$0xff]   ;;  %v2617_v2 = vld [vmem:[%s3755_s3 + $0x60] sm:$0xff]   ;;  %v2619_v5 = vld [vmem:[%s3755_s3 + $0x68] sm:$0xff]  }
  0x17   :  { %669 = vmatpush1.bf16.msra.mxu0 %v2479_v11  ;;  %2404 = vmatpush3.bf16.msra.mxu1 %v2612_v56  ;;  %v2618_v3 = vld [vmem:[%s3755_s3 + $0x20] sm:$0xff]   ;;  %v2539_v6 = vld [vmem:[%s3753_s1 + $0x194] ss:$8 sps:$4 sm:$0xff]   ;;  %v2537_v7 = vld [vmem:[%s3753_s1 + $0x190] ss:$8 sps:$4 sm:$0xff]  }
  0x18   :  { %670 = vmatprep.subr.bf16.mxu0 %v2480_v12  ;;  %2405 = vmatprep.subr.bf16.mxu1 %v2613_v57  ;;  %v2542_v8 = vld [vmem:[%s3753_s1 + $0x1a4] ss:$8 sps:$4 sm:$0xff]   ;;  %v2540_v9 = vld [vmem:[%s3753_s1 + $0x1a0] ss:$8 sps:$4 sm:$0xff]   ;;  %v2545_v10 = vld [vmem:[%s3753_s1 + $0x1b4] ss:$8 sps:$4 sm:$0xff]  }
  0x19   :  { %v2543_v11 = vld [vmem:[%s3753_s1 + $0x1b0] ss:$8 sps:$4 sm:$0xff]   ;;  %v2548_v12 = vld [vmem:[%s3753_s1 + $0x1c4] ss:$8 sps:$4 sm:$0xff]   ;;  %v2546_v13 = vld [vmem:[%s3753_s1 + $0x1c0] ss:$8 sps:$4 sm:$0xff]  }
  0x1a   :  { %v2551_v14 = vld [vmem:[%s3753_s1 + $0x1d4] ss:$8 sps:$4 sm:$0xff]   ;;  %v2549_v15 = vld [vmem:[%s3753_s1 + $0x1d0] ss:$8 sps:$4 sm:$0xff]   ;;  %v2578_v38 = vld [vmem:[%s3753_s1 + $0x264] ss:$8 sps:$4 sm:$0xff]  }
  0x1b   :  { %671 = vmatpush1.bf16.msra.mxu0 %v2482_v16  ;;  %2406 = vmatpush3.bf16.msra.mxu1 %v2614_v60  ;;  %v2554_v16 = vld [vmem:[%s3753_s1 + $0x1e4] ss:$8 sps:$4 sm:$0xff]   ;;  %v2575_v36 = vld [vmem:[%s3753_s1 + $0x254] ss:$8 sps:$4 sm:$0xff]   ;;  %v2573_v37 = vld [vmem:[%s3753_s1 + $0x250] ss:$8 sps:$4 sm:$0xff]  }
  0x1c   :  { %672 = vmatprep.subr.bf16.mxu0 %v2483_v17  ;;  %2407 = vmatprep.subr.bf16.mxu1 %v2615_v61  ;;  %v2552_v17 = vld [vmem:[%s3753_s1 + $0x1e0] ss:$8 sps:$4 sm:$0xff]   ;;  %v2599_v52 = vld [vmem:[%s3753_s1 + $0x2d4] ss:$8 sps:$4 sm:$0xff]   ;;  %v2597_v53 = vld [vmem:[%s3753_s1 + $0x2d0] ss:$8 sps:$4 sm:$0xff]  }
  0x1d   :  { %v2576_v39 = vld [vmem:[%s3753_s1 + $0x260] ss:$8 sps:$4 sm:$0xff]   ;;  %v2605_v56 = vld [vmem:[%s3753_s1 + $0x2f4] ss:$8 sps:$4 sm:$0xff]   ;;  %v2603_v57 = vld [vmem:[%s3753_s1 + $0x2f0] ss:$8 sps:$4 sm:$0xff]  }
  0x1e   :  { %v2600_v55 = vld [vmem:[%s3753_s1 + $0x2e0] ss:$8 sps:$4 sm:$0xff]   ;;  %v2608_v60 = vld [vmem:[%s3753_s1 + $0x304] ss:$8 sps:$4 sm:$0xff]  }
  0x1f   :  { %673 = vmatpush1.bf16.msra.mxu0 %v2485_v18  ;;  %2408 = vmatpush3.bf16.msra.mxu1 %v2616_v0  ;;  %v2557_v18 = vld [vmem:[%s3753_s1 + $0x1f4] ss:$8 sps:$4 sm:$0xff]  }
  0x20   :  { %674 = vmatprep.subr.bf16.mxu0 %v2486_v19  ;;  %2409 = vmatprep.subr.bf16.mxu1 %v2617_v2  ;;  %v2555_v19 = vld [vmem:[%s3753_s1 + $0x1f0] ss:$8 sps:$4 sm:$0xff]  }
  0x21   :  { %v39_v0 = vld [vmem:[%s3754_s0 + $0x30] sm:$0xff] }
  0x23   :  { %675 = vmatpush1.bf16.msra.mxu0 %v2488_v20  ;;  %2410 = vmatpush3.bf16.msra.mxu1 %v2618_v3  ;;  %v35_v20 = vld [vmem:[%s3754_s0 + $0x10] sm:$0xff]  ;;  %v2620_v3 = vld [vmem:[%s3755_s3 + $0x28] sm:$0xff]  }
  0x24   :  { %676 = vmatprep.subr.bf16.mxu0 %v2489_v21  ;;  %2411 = vmatprep.subr.bf16.mxu1 %v2619_v5  ;;  %v42_v21 = vld [vmem:[%s3754_s0 + $0x48] sm:$0xff]  ;;  %v2622_v5 = vld [vmem:[%s3755_s3 + $0x30] sm:$0xff]  }
  0x27   :  { %677 = vmatpush1.bf16.msra.mxu0 %v2491_v22  ;;  %v2560_v22 = vld [vmem:[%s3753_s1 + $0x204] ss:$8 sps:$4 sm:$0xff]   ;;  %2412 = vmatpush3.bf16.msra.mxu1 %v2620_v3 }
  0x28   :  { %678 = vmatprep.subr.bf16.mxu0 %v2492_v23  ;;  %v38_v23 = vld [vmem:[%s3754_s0 + $0x28] sm:$0xff] }
  0x2b   :  { %679 = vmatpush1.bf16.msra.mxu0 %v2494_v24  ;;  %v45_v24 = vld [vmem:[%s3754_s0 + $0x60] sm:$0xff] }
  0x2c   :  { %680 = vmatprep.subr.bf16.mxu0 %v2495_v25  ;;  %v49_v25 = vpack.c.bf16 %v42_v21, %v35_v20 }
  0x2f   :  { %681 = vmatpush1.bf16.msra.mxu0 %v2497_v26  ;;  %v2558_v26 = vld [vmem:[%s3753_s1 + $0x200] ss:$8 sps:$4 sm:$0xff]  }
  0x30   :  { %682 = vmatprep.subr.bf16.mxu0 %v2498_v27  ;;  %v52_v27 = vpack.c.bf16 %v45_v24, %v38_v23 }
  0x33   :  { %683 = vmatpush1.bf16.msra.mxu0 %v2500_v28  ;;  %v2563_v28 = vld [vmem:[%s3753_s1 + $0x214] ss:$8 sps:$4 sm:$0xff]  }
  0x34   :  { %684 = vmatprep.subr.bf16.mxu0 %v2501_v29  ;;  %v2561_v29 = vld [vmem:[%s3753_s1 + $0x210] ss:$8 sps:$4 sm:$0xff]  }
  0x37   :  { %685 = vmatpush1.bf16.msra.mxu0 %v2503_v30  ;;  %v2566_v30 = vld [vmem:[%s3753_s1 + $0x224] ss:$8 sps:$4 sm:$0xff]  }
  0x38   :  { %686 = vmatprep.subr.bf16.mxu0 %v2504_v31  ;;  %v2564_v31 = vld [vmem:[%s3753_s1 + $0x220] ss:$8 sps:$4 sm:$0xff]  }
  0x3b   :  { %687 = vmatpush1.bf16.msra.mxu0 %v2506_v32  ;;  %v2569_v32 = vld [vmem:[%s3753_s1 + $0x234] ss:$8 sps:$4 sm:$0xff]  }
  0x3c   :  { %688 = vmatprep.subr.bf16.mxu0 %v2507_v33  ;;  %v2567_v33 = vld [vmem:[%s3753_s1 + $0x230] ss:$8 sps:$4 sm:$0xff]  }
  0x3f   :  { %689 = vmatpush1.bf16.msra.mxu0 %v2509_v34  ;;  %v2572_v34 = vld [vmem:[%s3753_s1 + $0x244] ss:$8 sps:$4 sm:$0xff]  }
  0x40   :  { %701 = vmatprep.subr.bf16.mxu0 %v2512_v35  ;;  %v2570_v35 = vld [vmem:[%s3753_s1 + $0x240] ss:$8 sps:$4 sm:$0xff]  }
  0x42   :  { %691 = vmatmul.mubr.bf16.vlgmr.msra.gmra.mrb[0].mxu0 %v47_v40  ;;  %v2581_v40 = vld [vmem:[%s3753_s1 + $0x274] ss:$8 sps:$4 sm:$0xff]  }
  0x43   :  { %702 = vmatpush1.bf16.msra.mxu0 %v2510_v41  ;;  %733 = vmatprep.mubr.bf16.mxu0 %v50_v42  ;;  %v2579_v41 = vld [vmem:[%s3753_s1 + $0x270] ss:$8 sps:$4 sm:$0xff]   ;;  %v2584_v42 = vld [vmem:[%s3753_s1 + $0x284] ss:$8 sps:$4 sm:$0xff]  }
  0x44   :  { %703 = vmatprep.subr.bf16.mxu0 %v2515_v43  ;;  %v2582_v43 = vld [vmem:[%s3753_s1 + $0x280] ss:$8 sps:$4 sm:$0xff]  }
  0x47   :  { %704 = vmatpush1.bf16.msra.mxu0 %v2513_v44  ;;  %v2587_v44 = vld [vmem:[%s3753_s1 + $0x294] ss:$8 sps:$4 sm:$0xff]  }
  0x48   :  { %705 = vmatprep.subr.bf16.mxu0 %v2518_v45  ;;  %v2585_v45 = vld [vmem:[%s3753_s1 + $0x290] ss:$8 sps:$4 sm:$0xff]  }
  0x4b   :  { %706 = vmatpush1.bf16.msra.mxu0 %v2516_v46  ;;  %v2590_v46 = vld [vmem:[%s3753_s1 + $0x2a4] ss:$8 sps:$4 sm:$0xff]  }
  0x4c   :  { %707 = vmatprep.subr.bf16.mxu0 %v2521_v47  ;;  %v2588_v47 = vld [vmem:[%s3753_s1 + $0x2a0] ss:$8 sps:$4 sm:$0xff]  }
  0x4f   :  { %708 = vmatpush1.bf16.msra.mxu0 %v2519_v48  ;;  %v2593_v48 = vld [vmem:[%s3753_s1 + $0x2b4] ss:$8 sps:$4 sm:$0xff]  }
  0x50   :  { %709 = vmatprep.subr.bf16.mxu0 %v2524_v49  ;;  %v2591_v49 = vld [vmem:[%s3753_s1 + $0x2b0] ss:$8 sps:$4 sm:$0xff]  }
  0x53   :  { %710 = vmatpush1.bf16.msra.mxu0 %v2522_v50  ;;  %v2596_v50 = vld [vmem:[%s3753_s1 + $0x2c4] ss:$8 sps:$4 sm:$0xff]  }
  0x54   :  { %711 = vmatprep.subr.bf16.mxu0 %v2527_v51  ;;  %v2594_v51 = vld [vmem:[%s3753_s1 + $0x2c0] ss:$8 sps:$4 sm:$0xff]  }
  0x57   :  { %712 = vmatpush1.bf16.msra.mxu0 %v2525_v54  ;;  %v2602_v54 = vld [vmem:[%s3753_s1 + $0x2e4] ss:$8 sps:$4 sm:$0xff]  }
  0x58   :  { %713 = vmatprep.subr.bf16.mxu0 %v2530_v58  ;;  %v37_v58 = vld [vmem:[%s3754_s0 + $0x20] sm:$0xff] }
  0x5b   :  { %714 = vmatpush1.bf16.msra.mxu0 %v2528_v59  ;;  %v44_v59 = vld [vmem:[%s3754_s0 + $0x58] sm:$0xff] }
  0x5c   :  { %715 = vmatprep.subr.bf16.mxu0 %v2533_v62  ;;  %v51_v61 = vpack.c.bf16 %v44_v59, %v37_v58  ;;  %v2606_v62 = vld [vmem:[%s3753_s1 + $0x300] ss:$8 sps:$4 sm:$0xff]  }
  0x5d   :  { %v2256_v58 = vld [vmem:[%s3759_s4] ss:$0 sm:$0xff] }
  0x5f   :  { %716 = vmatpush1.bf16.msra.mxu0 %v2531_v63  ;;  %v2837_v63 = vmov 0  }
  0x60   :  { %717 = vmatprep.subr.bf16.mxu0 %v2536_v1  ;;  %v46_v1 = vld [vmem:[%s3754_s0 + $0x68] sm:$0xff] }
  0x61   :  { %v53_v2 = vpack.c.bf16 %v46_v1, %v39_v0 }
  0x63   :  { %718 = vmatpush1.bf16.msra.mxu0 %v2534_v4  ;;  %v2621_v4 = vld [vmem:[%s3755_s3 + $0x70] sm:$0xff]  }
  0x64   :  { %719 = vmatprep.subr.bf16.mxu0 %v2539_v6  ;;  %2413 = vmatprep.subr.bf16.mxu1 %v2621_v4  ;;  %v2623_v6 = vld [vmem:[%s3755_s3 + $0x78] sm:$0xff]  }
  0x65   :  { %2414 = vmatpush3.bf16.msra.mxu1 %v2622_v5  ;;  %v2649_v4 = vld [vmem:[%s3758_s7] ss:$28 sps:$4 sm:$0xff]  }
  0x66   :  { %2415 = vmatprep.subr.bf16.mxu1 %v2623_v6  ;;  %v2654_v6 = vld [vmem:[%s3758_s7 + $0x3c] ss:$28 sps:$4 sm:$0xff]  }
  0x67   :  { %720 = vmatpush1.bf16.msra.mxu0 %v2537_v7  ;;  %v2624_v7 = vld [vmem:[%s3755_s3 + $0x38] sm:$0xff]  }
  0x68   :  { %721 = vmatprep.subr.bf16.mxu0 %v2542_v8  ;;  %v2627_v8 = vld [vmem:[%s3756_s5 + $0x4] ss:$8 sps:$4 sm:$0xff]  }
  0x69   :  { %2416 = vmatpush3.bf16.msra.mxu1 %v2624_v7  ;;  %v2652_v7 = vld [vmem:[%s3758_s7 + $0x38] ss:$28 sps:$4 sm:$0xff]  }
  0x6a   :  { %1123 = vmatprep.subr.bf16.mxu1 %v2627_v8  ;;  %v2657_v8 = vld [vmem:[%s3758_s7 + $0x74] ss:$28 sps:$4 sm:$0xff]  }
  0x6b   :  { %722 = vmatpush1.bf16.msra.mxu0 %v2540_v9  ;;  %v154_v9 = vlaneseq }
  0x6c   :  { %723 = vmatprep.subr.bf16.mxu0 %v2545_v10 }
  0x6d   :  { %v3276_v10 = vshrl.u32 %v154_v9, 7  ;;  %v2655_v9 = vld [vmem:[%s3758_s7 + $0x70] ss:$28 sps:$4 sm:$0xff]  }
  0x6f   :  { %724 = vmatpush1.bf16.msra.mxu0 %v2543_v11  ;;  %v3279_v11 = vsub.s32 0, %v3276_v10 }
  0x70   :  { %725 = vmatprep.subr.bf16.mxu0 %v2548_v12  ;;  %v152_v12 = vld [vmem:[%s3757_s2] sm:$0x3] }
  0x73   :  { %726 = vmatpush1.bf16.msra.mxu0 %v2546_v13  ;;  %v3285_v13 = vsub.s32 1, %v3276_v10 }
  0x74   :  { %727 = vmatprep.subr.bf16.mxu0 %v2551_v14  ;;  %v157_v14 = vrot.slane %v152_v12, %v3279_v11 }
  0x77   :  { %728 = vmatpush1.bf16.msra.mxu0 %v2549_v15  ;;  %v161_v15 = vrot.slane %v152_v12, %v3285_v13  ;;  %v2660_v12 = vld [vmem:[%s3758_s7 + $0xac] ss:$28 sps:$4 sm:$0xff]  }
  0x78   :  { %729 = vmatprep.subr.bf16.mxu0 %v2554_v16 }
  0x7b   :  { %730 = vmatpush1.bf16.msra.mxu0 %v2552_v17 }
  0x7c   :  { %731 = vmatprep.subr.bf16.mxu0 %v2557_v18 }
  0x7f   :  { %732 = vmatpush1.bf16.msra.mxu0 %v2555_v19 }
  0x80   :  { %744 = vmatprep.subr.bf16.mxu0 %v2560_v22 }
  0x82   :  { %734 = vmatmul.mubr.bf16.vlgmr.msra.gmra.mrb[0].mxu0 %v49_v25 }
  0x83   :  { %745 = vmatpush1.bf16.msra.mxu0 %v2558_v26  ;;  %776 = vmatprep.mubr.bf16.mxu0 %v52_v27 }
  0x84   :  { %746 = vmatprep.subr.bf16.mxu0 %v2563_v28 }
  0x87   :  { %747 = vmatpush1.bf16.msra.mxu0 %v2561_v29 }
  0x88   :  { %748 = vmatprep.subr.bf16.mxu0 %v2566_v30  ;;  %v2625_v30 = vld [vmem:[%s3756_s5] ss:$8 sps:$4 sm:$0xff]  }
  0x8b   :  { %749 = vmatpush1.bf16.msra.mxu0 %v2564_v31  ;;  %v2630_v31 = vld [vmem:[%s3756_s5 + $0x14] ss:$8 sps:$4 sm:$0xff]  }
  0x8c   :  { %750 = vmatprep.subr.bf16.mxu0 %v2569_v32  ;;  %v2628_v32 = vld [vmem:[%s3756_s5 + $0x10] ss:$8 sps:$4 sm:$0xff]  }
  0x8f   :  { %751 = vmatpush1.bf16.msra.mxu0 %v2567_v33  ;;  %v2633_v33 = vld [vmem:[%s3756_s5 + $0x24] ss:$8 sps:$4 sm:$0xff]  }
  0x90   :  { %752 = vmatprep.subr.bf16.mxu0 %v2572_v34  ;;  %v2631_v34 = vld [vmem:[%s3756_s5 + $0x20] ss:$8 sps:$4 sm:$0xff]  }
  0x93   :  { %753 = vmatpush1.bf16.msra.mxu0 %v2570_v35  ;;  %v2636_v35 = vld [vmem:[%s3756_s5 + $0x34] ss:$8 sps:$4 sm:$0xff]  }
  0x94   :  { %754 = vmatprep.subr.bf16.mxu0 %v2575_v36  ;;  %v2634_v36 = vld [vmem:[%s3756_s5 + $0x30] ss:$8 sps:$4 sm:$0xff]  }
  0x97   :  { %755 = vmatpush1.bf16.msra.mxu0 %v2573_v37  ;;  %v2639_v37 = vld [vmem:[%s3756_s5 + $0x44] ss:$8 sps:$4 sm:$0xff]  }
  0x98   :  { %756 = vmatprep.subr.bf16.mxu0 %v2578_v38  ;;  %v2637_v38 = vld [vmem:[%s3756_s5 + $0x40] ss:$8 sps:$4 sm:$0xff]  }
  0x9b   :  { %757 = vmatpush1.bf16.msra.mxu0 %v2576_v39  ;;  %v2642_v39 = vld [vmem:[%s3756_s5 + $0x54] ss:$8 sps:$4 sm:$0xff]  }
  0x9c   :  { %758 = vmatprep.subr.bf16.mxu0 %v2581_v40  ;;  %v2640_v40 = vld [vmem:[%s3756_s5 + $0x50] ss:$8 sps:$4 sm:$0xff]  }
  0x9f   :  { %759 = vmatpush1.bf16.msra.mxu0 %v2579_v41  ;;  %v2645_v41 = vld [vmem:[%s3756_s5 + $0x64] ss:$8 sps:$4 sm:$0xff]  }
  0xa0   :  { %760 = vmatprep.subr.bf16.mxu0 %v2584_v42  ;;  %v2643_v42 = vld [vmem:[%s3756_s5 + $0x60] ss:$8 sps:$4 sm:$0xff]  }
  0xa3   :  { %761 = vmatpush1.bf16.msra.mxu0 %v2582_v43  ;;  %v2648_v43 = vld [vmem:[%s3756_s5 + $0x74] ss:$8 sps:$4 sm:$0xff]  }
  0xa4   :  { %762 = vmatprep.subr.bf16.mxu0 %v2587_v44  ;;  %v2646_v44 = vld [vmem:[%s3756_s5 + $0x70] ss:$8 sps:$4 sm:$0xff]  }
  0xa7   :  { %763 = vmatpush1.bf16.msra.mxu0 %v2585_v45  ;;  %v2651_v45 = vld [vmem:[%s3758_s7 + $0x4] ss:$28 sps:$4 sm:$0xff]  }
  0xa8   :  { %764 = vmatprep.subr.bf16.mxu0 %v2590_v46  ;;  %v2676_v46 = vld [vmem:[%s3758_s7 + $0x1d8] ss:$28 sps:$4 sm:$0xff]  }
  0xab   :  { %765 = vmatpush1.bf16.msra.mxu0 %v2588_v47  ;;  %v2677_v47 = vld [vmem:[%s3758_s7 + $0x18] ss:$28 sps:$4 sm:$0xff]  }
  0xac   :  { %766 = vmatprep.subr.bf16.mxu0 %v2593_v48  ;;  %v2681_v48 = vld [vmem:[%s3758_s7 + $0x210] ss:$28 sps:$4 sm:$0xff]  }
  0xaf   :  { %767 = vmatpush1.bf16.msra.mxu0 %v2591_v49  ;;  %v2682_v49 = vld [vmem:[%s3758_s7 + $0x50] ss:$28 sps:$4 sm:$0xff]  }
  0xb0   :  { %768 = vmatprep.subr.bf16.mxu0 %v2596_v50  ;;  %v2686_v50 = vld [vmem:[%s3758_s7 + $0x248] ss:$28 sps:$4 sm:$0xff]  }
  0xb3   :  { %769 = vmatpush1.bf16.msra.mxu0 %v2594_v51  ;;  %v2687_v51 = vld [vmem:[%s3758_s7 + $0x88] ss:$28 sps:$4 sm:$0xff]  }
  0xb4   :  { %770 = vmatprep.subr.bf16.mxu0 %v2599_v52  ;;  %v2691_v52 = vld [vmem:[%s3758_s7 + $0x280] ss:$28 sps:$4 sm:$0xff]  }
  0xb7   :  { %771 = vmatpush1.bf16.msra.mxu0 %v2597_v53  ;;  %v2692_v53 = vld [vmem:[%s3758_s7 + $0xc0] ss:$28 sps:$4 sm:$0xff]  }
  0xb8   :  { %772 = vmatprep.subr.bf16.mxu0 %v2602_v54  ;;  %v2696_v54 = vld [vmem:[%s3758_s7 + $0x2b8] ss:$28 sps:$4 sm:$0xff]  }
  0xbb   :  { %773 = vmatpush1.bf16.msra.mxu0 %v2600_v55  ;;  %v2697_v55 = vld [vmem:[%s3758_s7 + $0xf8] ss:$28 sps:$4 sm:$0xff]  }
  0xbc   :  { %774 = vmatprep.subr.bf16.mxu0 %v2605_v56  ;;  %v2701_v56 = vld [vmem:[%s3758_s7 + $0x2f0] ss:$28 sps:$4 sm:$0xff]  }
  0xbf   :  { %775 = vmatpush1.bf16.msra.mxu0 %v2603_v57 }
  0xc0   :  { %787 = vmatprep.subr.bf16.mxu0 %v2608_v60 }
  0xc2   :  { %777 = vmatmul.mubr.bf16.vlgmr.msra.gmra.mrb[0].mxu0 %v51_v61 }
  0xc3   :  { %788 = vmatpush1.bf16.msra.mxu0 %v2606_v62  ;;  %819 = vmatprep.mubr.bf16.mxu0 %v2837_v63 }
  0xc4   :  { %2423 = vmatprep.subr.bf16.mxu0 %v2676_v46 }
  0xce   :  { %2255 = vmatmul.mubr.msk.bf16.vlgmr.msra.gmra.mrb[0].mxu0 %vm654_vm0, %v53_v2 }
  0xcf   :  { %2424 = vmatpush3.bf16.msra.mxu0 %v2677_v47 }
  0xd0   :  { %2425 = vmatprep.subr.bf16.mxu0 %v2681_v48 }
  0xd3   :  { %2426 = vmatpush3.bf16.msra.mxu0 %v2682_v49 }
  0xd4   :  { %2427 = vmatprep.subr.bf16.mxu0 %v2686_v50 }
  0xd7   :  { %2428 = vmatpush3.bf16.msra.mxu0 %v2687_v51 }
  0xd8   :  { %2429 = vmatprep.subr.bf16.mxu0 %v2691_v52 }
  0xdb   :  { %2430 = vmatpush3.bf16.msra.mxu0 %v2692_v53 }
  0xdc   :  { %2431 = vmatprep.subr.bf16.mxu0 %v2696_v54 }
  0xdf   :  { %2432 = vmatpush3.bf16.msra.mxu0 %v2697_v55 }
  0xe0   :  { %2433 = vmatprep.subr.bf16.mxu0 %v2701_v56 }
 0x1a1   :  { %v821_v16 = vpop.f32.mrb[0].mxu0 }
 0x1a2   :  { %v2445_v17 = vadd.f32 %v821_v16, %v157_v14  ;;  %v823_v18 = vpop.f32.mrb[1].mxu0  ;;  %v2661_v16 = vld [vmem:[%s3758_s7 + $0xe0] ss:$28 sps:$4 sm:$0xff]  }
 0x1a3   :  { %v2446_v19 = vadd.f32 %v823_v18, %v161_v15  ;;  %v825_v20 = vpop.f32.mrb[2].mxu0  ;;  %v2664_v18 = vld [vmem:[%s3758_s7 + $0x118] ss:$28 sps:$4 sm:$0xff]  }
 0x1a4   :  { %v2447_v21 = vadd.f32 %v825_v20, %v157_v14  ;;  %v827_v22 = vpop.f32.mrb[3].mxu0  ;;  %v830_v24 = vmax.f32 %v2445_v17, 0.0  ;;  %v2658_v14 = vld [vmem:[%s3758_s7 + $0xa8] ss:$28 sps:$4 sm:$0xff]   ;;  %v2666_v17 = vld [vmem:[%s3758_s7 + $0x11c] ss:$28 sps:$4 sm:$0xff]  }
 0x1a5   :  { %v2448_v23 = vadd.f32 %v827_v22, %v161_v15  ;;  %v831_v26 = vmax.f32 %v2446_v19, 0.0  ;;  %v2663_v15 = vld [vmem:[%s3758_s7 + $0xe4] ss:$28 sps:$4 sm:$0xff]   ;;  %v2669_v19 = vld [vmem:[%s3758_s7 + $0x154] ss:$28 sps:$4 sm:$0xff]  }
 0x1a6   :  { %v832_v25 = vmax.f32 %v2447_v21, 0.0  ;;  %v2667_v20 = vld [vmem:[%s3758_s7 + $0x150] ss:$28 sps:$4 sm:$0xff]   ;;  %v2670_v22 = vld [vmem:[%s3758_s7 + $0x188] ss:$28 sps:$4 sm:$0xff]  }
 0x1a7   :  { %v833_v27 = vmax.f32 %v2448_v23, 0.0  ;;  %v2672_v21 = vld [vmem:[%s3758_s7 + $0x18c] ss:$28 sps:$4 sm:$0xff]   ;;  %v2675_v23 = vld [vmem:[%s3758_s7 + $0x1c4] ss:$28 sps:$4 sm:$0xff]  }
 0x1a8   :  { %v834_v28 = vpack.c.bf16 %v832_v25, %v830_v24  ;;  %v2673_v24 = vld [vmem:[%s3758_s7 + $0x1c0] ss:$28 sps:$4 sm:$0xff]  }
 0x1a9   :  { %v835_v29 = vpack.c.bf16 %v833_v27, %v831_v26  ;;  %v2680_v25 = vld [vmem:[%s3758_s7 + $0x1fc] ss:$28 sps:$4 sm:$0xff]   ;;  %v2685_v27 = vld [vmem:[%s3758_s7 + $0x234] ss:$28 sps:$4 sm:$0xff]  }
 0x1aa   :  { %v2678_v26 = vld [vmem:[%s3758_s7 + $0x1f8] ss:$28 sps:$4 sm:$0xff]  }
 0x1ab   :  { %1003 = vmatprep.mubr.bf16.mxu1 %v835_v29  ;;  %v2690_v29 = vld [vmem:[%s3758_s7 + $0x26c] ss:$28 sps:$4 sm:$0xff]  }
 0x1ac   :  { %1004 = vmatmul.mubr.bf16.vlgmr.msra.gmra.mrb[0].mxu1 %v834_v28  ;;  %v2683_v28 = vld [vmem:[%s3758_s7 + $0x230] ss:$28 sps:$4 sm:$0xff]  }
 0x1ad   :  { %1124 = vmatpush1.bf16.msra.mxu1 %v2625_v30  ;;  %1155 = vmatprep.mubr.bf16.mxu1 %v2837_v63  ;;  %v2688_v30 = vld [vmem:[%s3758_s7 + $0x268] ss:$28 sps:$4 sm:$0xff]  }
 0x1ae   :  { %1125 = vmatprep.subr.bf16.mxu1 %v2630_v31  ;;  %v2695_v31 = vld [vmem:[%s3758_s7 + $0x2a4] ss:$28 sps:$4 sm:$0xff]  }
 0x1b1   :  { %1126 = vmatpush1.bf16.msra.mxu1 %v2628_v32  ;;  %v2693_v32 = vld [vmem:[%s3758_s7 + $0x2a0] ss:$28 sps:$4 sm:$0xff]  }
 0x1b2   :  { %1127 = vmatprep.subr.bf16.mxu1 %v2633_v33  ;;  %v2700_v33 = vld [vmem:[%s3758_s7 + $0x2dc] ss:$28 sps:$4 sm:$0xff]  }
 0x1b5   :  { %1128 = vmatpush1.bf16.msra.mxu1 %v2631_v34  ;;  %v2698_v34 = vld [vmem:[%s3758_s7 + $0x2d8] ss:$28 sps:$4 sm:$0xff]  }
 0x1b6   :  { %1129 = vmatprep.subr.bf16.mxu1 %v2636_v35  ;;  %v2702_v35 = vld [vmem:[%s3758_s7 + $0x130] ss:$28 sps:$4 sm:$0xff]  }
 0x1b7   :  { %2434 = vmatpush3.bf16.msra.mxu0 %v2702_v35  ;;  %v2764_v35 = vld [vmem:[%s3758_s7 + $0x48] ss:$28 sps:$4 sm:$0xff]  }
 0x1b9   :  { %1130 = vmatpush1.bf16.msra.mxu1 %v2634_v36  ;;  %v2705_v36 = vld [vmem:[%s3758_s7 + $0x314] ss:$28 sps:$4 sm:$0xff]  }
 0x1ba   :  { %1131 = vmatprep.subr.bf16.mxu1 %v2639_v37  ;;  %v2703_v37 = vld [vmem:[%s3758_s7 + $0x310] ss:$28 sps:$4 sm:$0xff]  }
 0x1bd   :  { %1132 = vmatpush1.bf16.msra.mxu1 %v2637_v38  ;;  %v2706_v38 = vld [vmem:[%s3758_s7 + $0x328] ss:$28 sps:$4 sm:$0xff]  }
 0x1be   :  { %1133 = vmatprep.subr.bf16.mxu1 %v2642_v39  ;;  %v2707_v39 = vld [vmem:[%s3758_s7 + $0x168] ss:$28 sps:$4 sm:$0xff]   ;;  %2435 = vmatprep.subr.bf16.mxu0 %v2706_v38  ;;  %v2772_v38 = vld [vmem:[%s3758_s7 + $0xbc] ss:$28 sps:$4 sm:$0xff]  }
 0x1bf   :  { %2436 = vmatpush3.bf16.msra.mxu0 %v2707_v39  ;;  %v2770_v39 = vld [vmem:[%s3758_s7 + $0xb8] ss:$28 sps:$4 sm:$0xff]  }
 0x1c1   :  { %1134 = vmatpush1.bf16.msra.mxu1 %v2640_v40  ;;  %v2710_v40 = vld [vmem:[%s3758_s7 + $0x34c] ss:$28 sps:$4 sm:$0xff]  }
 0x1c2   :  { %1135 = vmatprep.subr.bf16.mxu1 %v2645_v41  ;;  %v2708_v41 = vld [vmem:[%s3758_s7 + $0x348] ss:$28 sps:$4 sm:$0xff]  }
 0x1c5   :  { %1136 = vmatpush1.bf16.msra.mxu1 %v2643_v42  ;;  %v2711_v42 = vld [vmem:[%s3758_s7 + $0x360] ss:$28 sps:$4 sm:$0xff]  }
 0x1c6   :  { %1137 = vmatprep.subr.bf16.mxu1 %v2648_v43  ;;  %v2712_v43 = vld [vmem:[%s3758_s7 + $0x1a0] ss:$28 sps:$4 sm:$0xff]   ;;  %2437 = vmatprep.subr.bf16.mxu0 %v2711_v42  ;;  %v2778_v42 = vld [vmem:[%s3758_s7 + $0x12c] ss:$28 sps:$4 sm:$0xff]  }
 0x1c7   :  { %2438 = vmatpush3.bf16.msra.mxu0 %v2712_v43  ;;  %v2776_v43 = vld [vmem:[%s3758_s7 + $0x128] ss:$28 sps:$4 sm:$0xff]  }
 0x1c9   :  { %1138 = vmatpush1.bf16.msra.mxu1 %v2646_v44  ;;  %v2715_v44 = vld [vmem:[%s3758_s7 + $0xc] ss:$28 sps:$4 sm:$0xff]  }
 0x1ca   :  { %1913 = vmatprep.subr.bf16.mxu1 %v2651_v45  ;;  %v1031_v45 = vld [vmem:[%s3760_s6] sm:$0x3] }
 0x1cb   :  { %v1036_v46 = vrot.slane %v1031_v45, %v3279_v11  ;;  %v1040_v47 = vrot.slane %v1031_v45, %v3285_v13  ;;  %v2779_v45 = vld [vmem:[%s3758_s7 + $0x160] ss:$28 sps:$4 sm:$0xff]  }
 0x27f   :  { %v2417_v57 = vpop.f32.mrb[0].mxu1 }
 0x280   :  { %v2418_v59 = vpop.f32.mrb[1].mxu1 }
 0x281   :  { %v2419_v60 = vadd.f32 %v2418_v59, %v2417_v57  ;;  %v2420_v61 = vpop.f32.mrb[2].mxu1 }
 0x282   :  { %v2421_v62 = vpop.f32.mrb[3].mxu1 }
 0x283   :  { %v1006_v63 = vadd.f32 %v2419_v60, %v2256_v58  ;;  %v2422_v0 = vadd.f32 %v2421_v62, %v2420_v61  ;;  %v2713_v62 = vld [vmem:[%s3758_s7 + $0x8] ss:$28 sps:$4 sm:$0xff]  }
 0x285   :  { %v1009_v1 = vadd.f32 %v2422_v0, %v2256_v58  ;;  %v1012_v2 = vmax.f32 %v1006_v63, 0.0  ;;  %v2718_v63 = vld [vmem:[%s3758_s7 + $0x44] ss:$28 sps:$4 sm:$0xff]  }
 0x286   :  { %v2716_v0 = vld [vmem:[%s3758_s7 + $0x40] ss:$28 sps:$4 sm:$0xff]  }
 0x287   :  { %v1013_v3 = vmax.f32 %v1009_v1, 0.0  ;;  %v2721_v1 = vld [vmem:[%s3758_s7 + $0x7c] ss:$28 sps:$4 sm:$0xff]  }
 0x289   :  { %v1014_v5 = vpack.c.bf16 %v1013_v3, %v1012_v2  ;;  %v2719_v2 = vld [vmem:[%s3758_s7 + $0x78] ss:$28 sps:$4 sm:$0xff]  }
 0x28a   :  { %v2724_v3 = vld [vmem:[%s3758_s7 + $0xb4] ss:$28 sps:$4 sm:$0xff]  }
 0x28b   :  { %1156 = vmatmul.mubr.bf16.vlgmr.msra.gmra.mrb[4].mxu1 %v1014_v5  ;;  %v2727_v5 = vld [vmem:[%s3758_s7 + $0xec] ss:$28 sps:$4 sm:$0xff]  }
 0x28c   :  { %1914 = vmatpush1.bf16.msra.mxu1 %v2649_v4  ;;  %v2722_v4 = vld [vmem:[%s3758_s7 + $0xb0] ss:$28 sps:$4 sm:$0xff]  }
 0x28d   :  { %1915 = vmatprep.subr.bf16.mxu1 %v2654_v6  ;;  %v2725_v6 = vld [vmem:[%s3758_s7 + $0xe8] ss:$28 sps:$4 sm:$0xff]  }
 0x290   :  { %1916 = vmatpush1.bf16.msra.mxu1 %v2652_v7  ;;  %v2730_v7 = vld [vmem:[%s3758_s7 + $0x124] ss:$28 sps:$4 sm:$0xff]  }
 0x291   :  { %1917 = vmatprep.subr.bf16.mxu1 %v2657_v8  ;;  %v2728_v8 = vld [vmem:[%s3758_s7 + $0x120] ss:$28 sps:$4 sm:$0xff]  }
 0x294   :  { %1918 = vmatpush1.bf16.msra.mxu1 %v2655_v9  ;;  %v2733_v9 = vld [vmem:[%s3758_s7 + $0x15c] ss:$28 sps:$4 sm:$0xff]  }
 0x295   :  { %1919 = vmatprep.subr.bf16.mxu1 %v2660_v12  ;;  %v2731_v12 = vld [vmem:[%s3758_s7 + $0x158] ss:$28 sps:$4 sm:$0xff]  }
 0x298   :  { %1920 = vmatpush1.bf16.msra.mxu1 %v2658_v14  ;;  %v2736_v14 = vld [vmem:[%s3758_s7 + $0x194] ss:$28 sps:$4 sm:$0xff]  }
 0x299   :  { %1921 = vmatprep.subr.bf16.mxu1 %v2663_v15  ;;  %v2734_v15 = vld [vmem:[%s3758_s7 + $0x190] ss:$28 sps:$4 sm:$0xff]  }
 0x29c   :  { %1922 = vmatpush1.bf16.msra.mxu1 %v2661_v16  ;;  %v2739_v16 = vld [vmem:[%s3758_s7 + $0x1cc] ss:$28 sps:$4 sm:$0xff]  }
 0x29d   :  { %1923 = vmatprep.subr.bf16.mxu1 %v2666_v17  ;;  %v2737_v17 = vld [vmem:[%s3758_s7 + $0x1c8] ss:$28 sps:$4 sm:$0xff]  }
 0x2a0   :  { %1924 = vmatpush1.bf16.msra.mxu1 %v2664_v18  ;;  %v2742_v18 = vld [vmem:[%s3758_s7 + $0x204] ss:$28 sps:$4 sm:$0xff]  }
 0x2a1   :  { %1925 = vmatprep.subr.bf16.mxu1 %v2669_v19  ;;  %v2740_v19 = vld [vmem:[%s3758_s7 + $0x200] ss:$28 sps:$4 sm:$0xff]  }
 0x2a4   :  { %1926 = vmatpush1.bf16.msra.mxu1 %v2667_v20  ;;  %v2745_v20 = vld [vmem:[%s3758_s7 + $0x23c] ss:$28 sps:$4 sm:$0xff]  }
 0x2a5   :  { %1927 = vmatprep.subr.bf16.mxu1 %v2672_v21  ;;  %v2743_v21 = vld [vmem:[%s3758_s7 + $0x238] ss:$28 sps:$4 sm:$0xff]  }
 0x2a8   :  { %1928 = vmatpush1.bf16.msra.mxu1 %v2670_v22  ;;  %v2748_v22 = vld [vmem:[%s3758_s7 + $0x274] ss:$28 sps:$4 sm:$0xff]  }
 0x2a9   :  { %1929 = vmatprep.subr.bf16.mxu1 %v2675_v23  ;;  %v2746_v23 = vld [vmem:[%s3758_s7 + $0x270] ss:$28 sps:$4 sm:$0xff]  }
 0x2ac   :  { %1930 = vmatpush1.bf16.msra.mxu1 %v2673_v24  ;;  %v2751_v24 = vld [vmem:[%s3758_s7 + $0x2ac] ss:$28 sps:$4 sm:$0xff]  }
 0x2ad   :  { %1931 = vmatprep.subr.bf16.mxu1 %v2680_v25  ;;  %v2749_v25 = vld [vmem:[%s3758_s7 + $0x2a8] ss:$28 sps:$4 sm:$0xff]  }
 0x2b0   :  { %1932 = vmatpush1.bf16.msra.mxu1 %v2678_v26  ;;  %v2754_v26 = vld [vmem:[%s3758_s7 + $0x2e4] ss:$28 sps:$4 sm:$0xff]  }
 0x2b1   :  { %1933 = vmatprep.subr.bf16.mxu1 %v2685_v27  ;;  %v2752_v27 = vld [vmem:[%s3758_s7 + $0x2e0] ss:$28 sps:$4 sm:$0xff]  }
 0x2b4   :  { %1934 = vmatpush1.bf16.msra.mxu1 %v2683_v28  ;;  %v2757_v28 = vld [vmem:[%s3758_s7 + $0x31c] ss:$28 sps:$4 sm:$0xff]  }
 0x2b5   :  { %1935 = vmatprep.subr.bf16.mxu1 %v2690_v29  ;;  %v2755_v29 = vld [vmem:[%s3758_s7 + $0x318] ss:$28 sps:$4 sm:$0xff]  }
 0x2b8   :  { %1936 = vmatpush1.bf16.msra.mxu1 %v2688_v30  ;;  %v2760_v30 = vld [vmem:[%s3758_s7 + $0x354] ss:$28 sps:$4 sm:$0xff]  }
 0x2b9   :  { %1937 = vmatprep.subr.bf16.mxu1 %v2695_v31  ;;  %v2758_v31 = vld [vmem:[%s3758_s7 + $0x350] ss:$28 sps:$4 sm:$0xff]  }
 0x2bc   :  { %1938 = vmatpush1.bf16.msra.mxu1 %v2693_v32  ;;  %v2763_v32 = vld [vmem:[%s3758_s7 + $0x14] ss:$28 sps:$4 sm:$0xff]  }
 0x2bd   :  { %1939 = vmatprep.subr.bf16.mxu1 %v2700_v33  ;;  %v2761_v33 = vld [vmem:[%s3758_s7 + $0x10] ss:$28 sps:$4 sm:$0xff]  }
 0x2c0   :  { %1940 = vmatpush1.bf16.msra.mxu1 %v2698_v34  ;;  %v2766_v34 = vld [vmem:[%s3758_s7 + $0x4c] ss:$28 sps:$4 sm:$0xff]  }
 0x2c1   :  { %1941 = vmatprep.subr.bf16.mxu1 %v2705_v36  ;;  %v2769_v36 = vld [vmem:[%s3758_s7 + $0x84] ss:$28 sps:$4 sm:$0xff]  }
 0x2c4   :  { %1942 = vmatpush1.bf16.msra.mxu1 %v2703_v37  ;;  %v2767_v37 = vld [vmem:[%s3758_s7 + $0x80] ss:$28 sps:$4 sm:$0xff]  }
 0x2c5   :  { %1943 = vmatprep.subr.bf16.mxu1 %v2710_v40  ;;  %v2775_v40 = vld [vmem:[%s3758_s7 + $0xf4] ss:$28 sps:$4 sm:$0xff]  }
 0x2c8   :  { %1944 = vmatpush1.bf16.msra.mxu1 %v2708_v41  ;;  %v2773_v41 = vld [vmem:[%s3758_s7 + $0xf0] ss:$28 sps:$4 sm:$0xff]  }
 0x2c9   :  { %1956 = vmatprep.subr.bf16.mxu1 %v2715_v44  ;;  %v2781_v44 = vld [vmem:[%s3758_s7 + $0x164] ss:$28 sps:$4 sm:$0xff]  }
 0x35e   :  { %v1157_v48 = vpop.f32.mrb[4].mxu1 }
 0x35f   :  { %v1158_v49 = vadd.f32 %v1157_v48, %v1036_v46  ;;  %v1159_v50 = vpop.f32.mrb[5].mxu1  ;;  %v2787_v48 = vld [vmem:[%s3758_s7 + $0x1d4] ss:$28 sps:$4 sm:$0xff]  }
 0x360   :  { %v1160_v51 = vadd.f32 %v1159_v50, %v1040_v47  ;;  %v1161_v52 = vpop.f32.mrb[6].mxu1  ;;  %v2790_v50 = vld [vmem:[%s3758_s7 + $0x20c] ss:$28 sps:$4 sm:$0xff]  }
 0x361   :  { %v1162_v53 = vadd.f32 %v1161_v52, %v1036_v46  ;;  %v1163_v54 = vpop.f32.mrb[7].mxu1  ;;  %v1166_v56 = vmax.f32 %v1158_v49, 0.0  ;;  %v2784_v46 = vld [vmem:[%s3758_s7 + $0x19c] ss:$28 sps:$4 sm:$0xff]   ;;  %v2785_v49 = vld [vmem:[%s3758_s7 + $0x1d0] ss:$28 sps:$4 sm:$0xff]  }
 0x362   :  { %v1164_v55 = vadd.f32 %v1163_v54, %v1040_v47  ;;  %v1167_v58 = vmax.f32 %v1160_v51, 0.0  ;;  %v2782_v47 = vld [vmem:[%s3758_s7 + $0x198] ss:$28 sps:$4 sm:$0xff]   ;;  %v2788_v51 = vld [vmem:[%s3758_s7 + $0x208] ss:$28 sps:$4 sm:$0xff]  }
 0x363   :  { %v1168_v57 = vmax.f32 %v1162_v53, 0.0  ;;  %v2793_v52 = vld [vmem:[%s3758_s7 + $0x244] ss:$28 sps:$4 sm:$0xff]   ;;  %v2796_v54 = vld [vmem:[%s3758_s7 + $0x27c] ss:$28 sps:$4 sm:$0xff]  }
 0x364   :  { %v1169_v59 = vmax.f32 %v1164_v55, 0.0  ;;  %v2791_v53 = vld [vmem:[%s3758_s7 + $0x240] ss:$28 sps:$4 sm:$0xff]   ;;  %v2794_v55 = vld [vmem:[%s3758_s7 + $0x278] ss:$28 sps:$4 sm:$0xff]  }
 0x365   :  { %v3489_v60 = vpack.c.bf16 %v1168_v57, %v1166_v56  ;;  %v2799_v56 = vld [vmem:[%s3758_s7 + $0x2b4] ss:$28 sps:$4 sm:$0xff]  }
 0x366   :  { %v3491_v61 = vpack.c.bf16 %v1169_v59, %v1167_v58  ;;  %v2797_v57 = vld [vmem:[%s3758_s7 + $0x2b0] ss:$28 sps:$4 sm:$0xff]   ;;  %v2800_v59 = vld [vmem:[%s3758_s7 + $0x2e8] ss:$28 sps:$4 sm:$0xff]  }
 0x367   :  { %v2802_v58 = vld [vmem:[%s3758_s7 + $0x2ec] ss:$28 sps:$4 sm:$0xff]  }
 0x368   :  { %1945 = vmatprep.mubr.bf16.mxu1 %v3491_v61  ;;  %2074 = vmatprep.mubr.bf16.mxu0 %v3491_v61 }
 0x369   :  { %1946 = vmatmul.mubr.bf16.vlgmr.msra.gmra.mrb[8].mxu1 %v3489_v60  ;;  %2075 = vmatmul.mubr.bf16.vlgmr.msra.gmra.mrb[4].mxu0 %v3489_v60 }
 0x36a   :  { %1957 = vmatpush1.bf16.msra.mxu1 %v2713_v62  ;;  %1988 = vmatprep.mubr.bf16.mxu1 %v3491_v61  ;;  %v2803_v62 = vld [vmem:[%s3758_s7 + $0x320] ss:$28 sps:$4 sm:$0xff]  }
 0x36b   :  { %1958 = vmatprep.subr.bf16.mxu1 %v2718_v63  ;;  %v2808_v63 = vld [vmem:[%s3758_s7 + $0x35c] ss:$28 sps:$4 sm:$0xff]  }
 0x36e   :  { %1959 = vmatpush1.bf16.msra.mxu1 %v2716_v0  ;;  %v2806_v0 = vld [vmem:[%s3758_s7 + $0x358] ss:$28 sps:$4 sm:$0xff]  }
 0x36f   :  { %1960 = vmatprep.subr.bf16.mxu1 %v2721_v1  ;;  %v3693_v1 = vld [vmem:[%s3761_s8] sm:$0x7f] }
 0x372   :  { %1961 = vmatpush1.bf16.msra.mxu1 %v2719_v2  ;;  %v1328_v2 = vsub.s32 6, %v3276_v10 }
 0x373   :  { %1962 = vmatprep.subr.bf16.mxu1 %v2724_v3  ;;  %v1305_v3 = vrot.slane %v3693_v1, %v3279_v11 }
 0x376   :  { %1963 = vmatpush1.bf16.msra.mxu1 %v2722_v4  ;;  %v1309_v4 = vrot.slane %v3693_v1, %v3285_v13 }
 0x377   :  { %1964 = vmatprep.subr.bf16.mxu1 %v2727_v5 }
 0x37a   :  { %1965 = vmatpush1.bf16.msra.mxu1 %v2725_v6 }
 0x37b   :  { %1966 = vmatprep.subr.bf16.mxu1 %v2730_v7  ;;  %v1329_v7 = vrot.slane %v3693_v1, %v1328_v2 }
 0x37e   :  { %1967 = vmatpush1.bf16.msra.mxu1 %v2728_v8 }
 0x37f   :  { %1968 = vmatprep.subr.bf16.mxu1 %v2733_v9 }
 0x382   :  { %1969 = vmatpush1.bf16.msra.mxu1 %v2731_v12 }
 0x383   :  { %1970 = vmatprep.subr.bf16.mxu1 %v2736_v14 }
 0x386   :  { %1971 = vmatpush1.bf16.msra.mxu1 %v2734_v15 }
 0x387   :  { %1972 = vmatprep.subr.bf16.mxu1 %v2739_v16 }
 0x38a   :  { %1973 = vmatpush1.bf16.msra.mxu1 %v2737_v17 }
 0x38b   :  { %1974 = vmatprep.subr.bf16.mxu1 %v2742_v18 }
 0x38e   :  { %1975 = vmatpush1.bf16.msra.mxu1 %v2740_v19 }
 0x38f   :  { %1976 = vmatprep.subr.bf16.mxu1 %v2745_v20 }
 0x392   :  { %1977 = vmatpush1.bf16.msra.mxu1 %v2743_v21 }
 0x393   :  { %1978 = vmatprep.subr.bf16.mxu1 %v2748_v22 }
 0x396   :  { %1979 = vmatpush1.bf16.msra.mxu1 %v2746_v23 }
 0x397   :  { %1980 = vmatprep.subr.bf16.mxu1 %v2751_v24 }
 0x39a   :  { %1981 = vmatpush1.bf16.msra.mxu1 %v2749_v25 }
 0x39b   :  { %1982 = vmatprep.subr.bf16.mxu1 %v2754_v26 }
 0x39e   :  { %1983 = vmatpush1.bf16.msra.mxu1 %v2752_v27 }
 0x39f   :  { %1984 = vmatprep.subr.bf16.mxu1 %v2757_v28 }
 0x3a2   :  { %1985 = vmatpush1.bf16.msra.mxu1 %v2755_v29 }
 0x3a3   :  { %1986 = vmatprep.subr.bf16.mxu1 %v2760_v30 }
 0x3a6   :  { %1987 = vmatpush1.bf16.msra.mxu1 %v2758_v31 }
 0x3a7   :  { %1999 = vmatprep.subr.bf16.mxu1 %v2763_v32 }
 0x3a9   :  { %1989 = vmatmul.mubr.bf16.vlgmr.msra.gmra.mrb[12].mxu1 %v3489_v60 }
 0x3aa   :  { %2000 = vmatpush1.bf16.msra.mxu1 %v2761_v33  ;;  %2031 = vmatprep.mubr.bf16.mxu1 %v3491_v61  ;;  %v2805_v61 = vld [vmem:[%s3758_s7 + $0x324] ss:$28 sps:$4 sm:$0xff]  }
 0x3ab   :  { %2001 = vmatprep.subr.bf16.mxu1 %v2766_v34 }
 0x3ae   :  { %2002 = vmatpush1.bf16.msra.mxu1 %v2764_v35 }
 0x3af   :  { %2003 = vmatprep.subr.bf16.mxu1 %v2769_v36 }
 0x3b2   :  { %2004 = vmatpush1.bf16.msra.mxu1 %v2767_v37 }
 0x3b3   :  { %2005 = vmatprep.subr.bf16.mxu1 %v2772_v38 }
 0x3b6   :  { %2006 = vmatpush1.bf16.msra.mxu1 %v2770_v39 }
 0x3b7   :  { %2007 = vmatprep.subr.bf16.mxu1 %v2775_v40 }
 0x3ba   :  { %2008 = vmatpush1.bf16.msra.mxu1 %v2773_v41 }
 0x3bb   :  { %2009 = vmatprep.subr.bf16.mxu1 %v2778_v42 }
 0x3be   :  { %2010 = vmatpush1.bf16.msra.mxu1 %v2776_v43 }
 0x3bf   :  { %2011 = vmatprep.subr.bf16.mxu1 %v2781_v44 }
 0x3c2   :  { %2012 = vmatpush1.bf16.msra.mxu1 %v2779_v45 }
 0x3c3   :  { %2013 = vmatprep.subr.bf16.mxu1 %v2784_v46  ;;  %v1312_v46 = vsub.s32 2, %v3276_v10 }
 0x3c6   :  { %2014 = vmatpush1.bf16.msra.mxu1 %v2782_v47  ;;  %v1316_v47 = vsub.s32 3, %v3276_v10 }
 0x3c7   :  { %2015 = vmatprep.subr.bf16.mxu1 %v2787_v48  ;;  %v1313_v48 = vrot.slane %v3693_v1, %v1312_v46 }
 0x3ca   :  { %2016 = vmatpush1.bf16.msra.mxu1 %v2785_v49  ;;  %v1317_v49 = vrot.slane %v3693_v1, %v1316_v47 }
 0x3cb   :  { %2017 = vmatprep.subr.bf16.mxu1 %v2790_v50 }
 0x3ce   :  { %2018 = vmatpush1.bf16.msra.mxu1 %v2788_v51 }
 0x3cf   :  { %2019 = vmatprep.subr.bf16.mxu1 %v2793_v52 }
 0x3d2   :  { %2020 = vmatpush1.bf16.msra.mxu1 %v2791_v53 }
 0x3d3   :  { %2021 = vmatprep.subr.bf16.mxu1 %v2796_v54 }
 0x3d6   :  { %2022 = vmatpush1.bf16.msra.mxu1 %v2794_v55 }
 0x3d7   :  { %2023 = vmatprep.subr.bf16.mxu1 %v2799_v56 }
 0x3da   :  { %2024 = vmatpush1.bf16.msra.mxu1 %v2797_v57 }
 0x3db   :  { %2025 = vmatprep.subr.bf16.mxu1 %v2802_v58 }
 0x3de   :  { %2026 = vmatpush1.bf16.msra.mxu1 %v2800_v59 }
 0x3df   :  { %2027 = vmatprep.subr.bf16.mxu1 %v2805_v61 }
 0x3e2   :  { %2028 = vmatpush1.bf16.msra.mxu1 %v2803_v62 }
 0x3e3   :  { %2029 = vmatprep.subr.bf16.mxu1 %v2808_v63 }
 0x3e6   :  { %2030 = vmatpush1.bf16.msra.mxu1 %v2806_v0 }
 0x3e9   :  { %2032 = vmatmul.mubr.bf16.vlgmr.msra.gmra.mrb[16].mxu1 %v3489_v60 }
 0x43c   :  { %v1947_v5 = vpop.f32.mrb[8].mxu1  ;;  %v2439_v6 = vpop.f32.mrb[4].mxu0 }
 0x43d   :  { %v1948_v8 = vadd.f32 %v1947_v5, %v1305_v3  ;;  %v1949_v9 = vpop.f32.mrb[9].mxu1  ;;  %v2440_v60 = vpop.f32.mrb[5].mxu0 }
 0x43e   :  { %v1950_v12 = vadd.f32 %v1949_v9, %v1309_v4  ;;  %v2441_v14 = vadd.f32 %v2440_v60, %v2439_v6  ;;  %v1951_v15 = vpop.f32.mrb[10].mxu1  ;;  %v2442_v16 = vpop.f32.mrb[6].mxu0 }
 0x43f   :  { %v2083_v17 = vmul.f32 0.5, %v1948_v8  ;;  %v1952_v18 = vadd.f32 %v1951_v15, %v1305_v3  ;;  %v1953_v19 = vpop.f32.mrb[11].mxu1  ;;  %v2443_v20 = vpop.f32.mrb[7].mxu0  ;;  %v1324_v15 = vsub.s32 5, %v3276_v10 }
 0x440   :  { %v2084_v21 = vmul.f32 0.5, %v1950_v12  ;;  %v2077_v11 = vadd.f32 %v2441_v14, %v1329_v7  ;;  %v1954_v22 = vadd.f32 %v1953_v19, %v1309_v4  ;;  %v2444_v23 = vadd.f32 %v2443_v20, %v2442_v16 }
 0x441   :  { %2809 = vtanh.f32 %v2083_v17  ;;  %v2090_v13 = vmul.f32 0.5, %v1952_v18  ;;  %v1320_v14 = vsub.s32 4, %v3276_v10  ;;  %v1325_v17 = vrot.slane %v3693_v1, %v1324_v15 }
 0x442   :  { %2811 = vtanh.f32 %v2084_v21  ;;  %v2089_v24 = vmul.f32 0.5, %v2077_v11  ;;  %v2091_v25 = vmul.f32 0.5, %v1954_v22  ;;  %v2080_v26 = vadd.f32 %v2444_v23, %v1329_v7 }
 0x443   :  { %2813 = vtanh.f32 %v2090_v13  ;;  %v1321_v16 = vrot.slane %v3693_v1, %v1320_v14 }
 0x444   :  { %2815 = vtanh.f32 %v2089_v24  ;;  %v2096_v27 = vmul.f32 0.5, %v2080_v26 }
 0x445   :  { %2817 = vtanh.f32 %v2091_v25 }
 0x446   :  { %2819 = vtanh.f32 %v2096_v27 }
 0x44b   :  { %v2810_v28 = vpop.eup %2809 }
 0x44c   :  { %v2812_v29 = vpop.eup %2811  ;;  %v2111_v30 = vadd.f32 1.0, %v2810_v28 }
 0x44d   :  { %v2814_v31 = vpop.eup %2813  ;;  %v2112_v32 = vadd.f32 1.0, %v2812_v29 }
 0x44e   :  { %v2816_v33 = vpop.eup %2815  ;;  %v2125_v34 = vmul.f32 0.5, %v2111_v30  ;;  %v2118_v35 = vadd.f32 1.0, %v2814_v31 }
 0x44f   :  { %v2818_v36 = vpop.eup %2817  ;;  %v2126_v37 = vmul.f32 0.5, %v2112_v32  ;;  %v2117_v38 = vadd.f32 1.0, %v2816_v33 }
 0x450   :  { %v2820_v39 = vpop.eup %2819  ;;  %2139 = vst [vmem:[%s3762_s9] sm:$0xff] %v2125_v34  ;;  %v2132_v40 = vmul.f32 0.5, %v2118_v35  ;;  %v2119_v41 = vadd.f32 1.0, %v2818_v36 }
 0x451   :  { %2140 = vst [vmem:[%s3762_s9 + $0x8] sm:$0xff] %v2126_v37  ;;  %v2131_v42 = vmul.f32 0.5, %v2117_v38  ;;  %v2124_v43 = vadd.f32 1.0, %v2820_v39 }
 0x452   :  { %2146 = vst [vmem:[%s3762_s9 + $0x38] sm:$0xff] %v2132_v40  ;;  %v2133_v44 = vmul.f32 0.5, %v2119_v41 }
 0x453   :  { %2145 = vst.msk [vmem:[%s3762_s9 + $0x30] sm:$0xff] %vm654_vm0, %v2131_v42  ;;  %v2138_v45 = vmul.f32 0.5, %v2124_v43 }
 0x454   :  { %2147 = vst [vmem:[%s3762_s9 + $0x40] sm:$0xff] %v2133_v44 }
 0x455   :  { %2152 = vst.msk [vmem:[%s3762_s9 + $0x68] sm:$0xff] %vm654_vm0, %v2138_v45 }
 0x47c   :  { %v1990_v50 = vpop.f32.mrb[12].mxu1 }
 0x47d   :  { %v1991_v51 = vadd.f32 %v1990_v50, %v1313_v48  ;;  %v1992_v52 = vpop.f32.mrb[13].mxu1 }
 0x47e   :  { %v1993_v53 = vadd.f32 %v1992_v52, %v1317_v49  ;;  %v1994_v54 = vpop.f32.mrb[14].mxu1 }
 0x47f   :  { %v2085_v55 = vmul.f32 0.5, %v1991_v51  ;;  %v1995_v56 = vadd.f32 %v1994_v54, %v1313_v48  ;;  %v1996_v57 = vpop.f32.mrb[15].mxu1 }
 0x480   :  { %v2086_v58 = vmul.f32 0.5, %v1993_v53  ;;  %v1997_v59 = vadd.f32 %v1996_v57, %v1317_v49 }
 0x481   :  { %2821 = vtanh.f32 %v2085_v55  ;;  %v2092_v61 = vmul.f32 0.5, %v1995_v56 }
 0x482   :  { %2823 = vtanh.f32 %v2086_v58  ;;  %v2093_v62 = vmul.f32 0.5, %v1997_v59 }
 0x483   :  { %2825 = vtanh.f32 %v2092_v61 }
 0x484   :  { %2827 = vtanh.f32 %v2093_v62 }
 0x48b   :  { %v2822_v63 = vpop.eup %2821 }
 0x48c   :  { %v2824_v0 = vpop.eup %2823  ;;  %v2113_v2 = vadd.f32 1.0, %v2822_v63 }
 0x48d   :  { %v2826_v3 = vpop.eup %2825  ;;  %v2114_v4 = vadd.f32 1.0, %v2824_v0 }
 0x48e   :  { %v2828_v5 = vpop.eup %2827  ;;  %v2127_v6 = vmul.f32 0.5, %v2113_v2  ;;  %v2120_v7 = vadd.f32 1.0, %v2826_v3 }
 0x48f   :  { %v2128_v8 = vmul.f32 0.5, %v2114_v4  ;;  %v2121_v9 = vadd.f32 1.0, %v2828_v5 }
 0x490   :  { %2141 = vst [vmem:[%s3762_s9 + $0x10] sm:$0xff] %v2127_v6  ;;  %v2134_v60 = vmul.f32 0.5, %v2120_v7 }
 0x491   :  { %2142 = vst [vmem:[%s3762_s9 + $0x18] sm:$0xff] %v2128_v8  ;;  %v2135_v12 = vmul.f32 0.5, %v2121_v9 }
 0x492   :  { %2148 = vst [vmem:[%s3762_s9 + $0x48] sm:$0xff] %v2134_v60 }
 0x493   :  { %2149 = vst [vmem:[%s3762_s9 + $0x50] sm:$0xff] %v2135_v12 }
 0x4bc   :  { %v2033_v18 = vpop.f32.mrb[16].mxu1 }
 0x4bd   :  { %v2034_v19 = vadd.f32 %v2033_v18, %v1321_v16  ;;  %v2035_v20 = vpop.f32.mrb[17].mxu1 }
 0x4be   :  { %v2036_v21 = vadd.f32 %v2035_v20, %v1325_v17  ;;  %v2037_v11 = vpop.f32.mrb[18].mxu1 }
 0x4bf   :  { %v2087_v22 = vmul.f32 0.5, %v2034_v19  ;;  %v2038_v23 = vadd.f32 %v2037_v11, %v1321_v16  ;;  %v2039_v13 = vpop.f32.mrb[19].mxu1 }
 0x4c0   :  { %v2088_v24 = vmul.f32 0.5, %v2036_v21  ;;  %v2040_v25 = vadd.f32 %v2039_v13, %v1325_v17 }
 0x4c1   :  { %2829 = vtanh.f32 %v2087_v22  ;;  %v2094_v26 = vmul.f32 0.5, %v2038_v23 }
 0x4c2   :  { %2831 = vtanh.f32 %v2088_v24  ;;  %v2095_v27 = vmul.f32 0.5, %v2040_v25 }
 0x4c3   :  { %2833 = vtanh.f32 %v2094_v26 }
 0x4c4   :  { %2835 = vtanh.f32 %v2095_v27 }
 0x4cb   :  { %v2830_v10 = vpop.eup %2829 }
 0x4cc   :  { %v2832_v28 = vpop.eup %2831  ;;  %v2115_v29 = vadd.f32 1.0, %v2830_v10 }
 0x4cd   :  { %v2834_v1 = vpop.eup %2833  ;;  %v2116_v30 = vadd.f32 1.0, %v2832_v28 }
 0x4ce   :  { %v2836_v31 = vpop.eup %2835  ;;  %v2129_v32 = vmul.f32 0.5, %v2115_v29  ;;  %v2122_v33 = vadd.f32 1.0, %v2834_v1 }
 0x4cf   :  { %v2130_v34 = vmul.f32 0.5, %v2116_v30  ;;  %v2123_v35 = vadd.f32 1.0, %v2836_v31 }
 0x4d0   :  { %2143 = vst [vmem:[%s3762_s9 + $0x20] sm:$0xff] %v2129_v32  ;;  %v2136_v36 = vmul.f32 0.5, %v2122_v33 }
 0x4d1   :  { %2144 = vst [vmem:[%s3762_s9 + $0x28] sm:$0xff] %v2130_v34  ;;  %v2137_v37 = vmul.f32 0.5, %v2123_v35 }
 0x4d2   :  { %2150 = vst [vmem:[%s3762_s9 + $0x58] sm:$0xff] %v2136_v36 }
 0x4d3   :  { %2151 = vst [vmem:[%s3762_s9 + $0x60] sm:$0xff] %v2137_v37 }

</bundles_post_ra>
